<compile_context>
chip_gen: v6e
topology: v6e:2x2x1
jax: 0.10.0
libtpu: 0.0.40
codegen_flags: <defaults>
</compile_context>

<pallas_src>
import functools

import jax
import jax.numpy as jnp
import numpy as np
from jax.experimental import pallas as pl
from jax.experimental.pallas import tpu as pltpu

_LANE = 128
_SUBLANE = 8


def _round_up(x, m):
    return ((x + m - 1) // m) * m


# --------------------------------------------------------------------------- #
# Kernel
# --------------------------------------------------------------------------- #
def _mlp_kernel(*refs, n_layers, softmax_cols, compute_dtype):
    """refs = (x_ref, w0, b0, w1, b1, ..., w_last, b_last, out_ref).

    n_layers x [Linear + ReLU] -> Linear on a (tb, in) activation tile.
    Every layer's output width is a multiple of 128 (zero-padded at prepare
    time), so all intermediates and the final store are lane-dense.
    If softmax_cols > 0, softmax is applied over the leading `softmax_cols`
    output columns only (actor head); other valid columns pass through raw
    (critic head); zero-padded columns stay exactly 0.
    """
    x_ref = refs[0]
    out_ref = refs[-1]
    param_refs = refs[1:-1]

    h = x_ref[...]
    for i in range(n_layers + 1):  # unrolled: distinct param refs per layer
        w = param_refs[2 * i][...]
        b = param_refs[2 * i + 1][...]
        lhs = h if h.dtype == compute_dtype else h.astype(compute_dtype)
        h = jnp.dot(lhs, w, preferred_element_type=jnp.float32) + b
        if i < n_layers:
            h = jnp.maximum(h, 0.0)  # nn.ReLU()

    if softmax_cols > 0:  # nn.Softmax(dim=-1) over the actor columns only.
        col = jax.lax.broadcasted_iota(jnp.int32, h.shape, 1)
        in_sm = col < softmax_cols
        m = jnp.max(jnp.where(in_sm, h, -jnp.inf), axis=-1, keepdims=True)
        e = jnp.where(in_sm, jnp.exp(h - m), 0.0)
        denom = jnp.sum(e, axis=-1, keepdims=True)
        # exact reciprocal keeps row-sums == 1 within 1e-5 (approx=True would not)
        sm = e * pl.reciprocal(denom, approx=False)
        h = jnp.where(in_sm, sm, h)

    out_ref[...] = h.astype(out_ref.dtype)


# --------------------------------------------------------------------------- #
# Init-time parameter preparation (hoisted out of the per-step hot path)
# --------------------------------------------------------------------------- #
class PreparedMLP:
    """Pre-fused, lane-padded, pre-cast parameters + static kernel metadata."""

    def __init__(self, flat_params, n_layers, softmax_cols, valid_cols,
                 in_dim, out_pad, max_width, compute_dtype):
        self.flat_params = tuple(flat_params)
        self.n_layers = n_layers
        self.softmax_cols = softmax_cols
        self.valid_cols = valid_cols
        self.in_dim = in_dim
        self.out_pad = out_pad
        self.max_width = max_width
        self.compute_dtype = compute_dtype


def _lane_pad_layers(params):
    """Zero-pad every layer's output width to a multiple of 128 lanes.

    Padded output columns get zero weight columns + zero bias, so their
    activations are exactly 0; the next layer's corresponding (padded) weight
    rows are zero, so they contribute nothing.  Result: all intermediate
    activation tiles are lane-dense (tb, multiple-of-128) with no change in
    the valid outputs.
    """
    padded = []
    prev_col_pad = 0
    for w, b in params:
        _, out_dim = w.shape
        col_pad = _round_up(out_dim, _LANE) - out_dim
        w = jnp.pad(w, ((0, prev_col_pad), (0, col_pad)))
        b = jnp.pad(b, ((0, 0), (0, col_pad)))
        padded.append((w, b))
        prev_col_pad = col_pad
    return padded


def _fuse_heads(actor_params, critic_params):
    """Fuse two same-depth MLP heads into one wider stack (block-diagonal weights).

    NOTE: block-diagonal fusion doubles hidden-layer weight bytes / MXU FLOPs
    (half are multiplies by zero).  That is the right trade while each head's
    width is below the MXU width (<= 256); for per-head hidden sizes >= 256,
    prefer two separate jnp.dot calls on per-head weight refs inside one
    kernel body instead of this block-diagonal construction.
    """
    assert len(actor_params) == len(critic_params)
    fused = []
    for i, ((wa, ba), (wc, bc)) in enumerate(zip(actor_params, critic_params)):
        if i == 0:
            w = jnp.concatenate([wa, wc], axis=1)                      # (in, Ha+Hc)
        else:
            top = jnp.concatenate(
                [wa, jnp.zeros((wa.shape[0], wc.shape[1]), wa.dtype)], axis=1)
            bot = jnp.concatenate(
                [jnp.zeros((wc.shape[0], wa.shape[1]), wc.dtype), wc], axis=1)
            w = jnp.concatenate([top, bot], axis=0)                    # block-diagonal
        b = jnp.concatenate([ba, bc], axis=1)
        fused.append((w, b))
    return fused


def _prepare(params, *, softmax_cols, valid_cols, compute_dtype):
    in_dim = params[0][0].shape[0]
    padded = _lane_pad_layers(params)
    flat = []
    for w, b in padded:
        flat.append(w.astype(compute_dtype))   # bf16 halves weight DMA (v5e/v6e path)
        flat.append(b.astype(jnp.float32))     # bias added post f32 accumulation
    flat = [jax.block_until_ready(a) for a in flat]  # materialize once at init
    out_pad = padded[-1][0].shape[1]
    max_width = max([in_dim] + [w.shape[1] for w, _ in padded])
    return PreparedMLP(flat, len(params) - 1, softmax_cols, valid_cols,
                       in_dim, out_pad, max_width, compute_dtype)


def prepare_single_head(params, output_size, compute_dtype=jnp.float32):
    """Single ActorCriticNN head (softmax iff output_size != 1, like the module)."""
    softmax_cols = output_size if output_size != 1 else 0
    return _prepare(params, softmax_cols=softmax_cols, valid_cols=output_size,
                    compute_dtype=compute_dtype)


def prepare_fused_actor_critic(actor_params, critic_params, actor_out_size,
                               compute_dtype=jnp.float32):
    """Actor (softmax) + critic (scalar) heads fused for a single pallas_call."""
    fused = _fuse_heads(actor_params, critic_params)
    return _prepare(fused, softmax_cols=actor_out_size,
                    valid_cols=actor_out_size + 1, compute_dtype=compute_dtype)


# --------------------------------------------------------------------------- #
# Hot-path forward
# --------------------------------------------------------------------------- #
def _choose_batch_tile(batch, batch_tile):
    pb = _round_up(batch, _SUBLANE)
    if batch_tile is not None:
        tb = min(_round_up(batch_tile, _SUBLANE), pb)
    elif pb >= 2 * _SUBLANE and pb % (2 * _SUBLANE) == 0 and pb // 2 <= 1024:
        # Fat tiles (per-grid-step overhead dominates at MLP sizes), but keep
        # >= 2 grid steps so both v7x TensorCores get work on the parallel axis.
        tb = pb // 2
    else:
        tb = min(pb, 1024)
    padded_batch = _round_up(batch, tb)
    return tb, padded_batch


def mlp_forward(x, prep, *, batch_tile=None):
    """Run the prepared MLP on x with one pallas_call; returns (batch, valid_cols)."""
    batch, in_dim = x.shape
    assert in_dim == prep.in_dim, (in_dim, prep.in_dim)

    if prep.compute_dtype != jnp.float32 and x.dtype != prep.compute_dtype:
        x = x.astype(prep.compute_dtype)   # v5e: halve input DMA, skip in-kernel cast

    tb, padded_batch = _choose_batch_tile(batch, batch_tile)
    if padded_batch != batch:              # avoided whenever tb divides batch
        x = jnp.pad(x, ((0, padded_batch - batch), (0, 0)))
    grid = (padded_batch // tb,)

    kernel = functools.partial(
        _mlp_kernel, n_layers=prep.n_layers, softmax_cols=prep.softmax_cols,
        compute_dtype=prep.compute_dtype)

    x_spec = pl.BlockSpec((tb, in_dim), lambda i: (i, 0))
    out_spec = pl.BlockSpec((tb, prep.out_pad), lambda i: (i, 0))

    # Advisory cost estimate for XLA's scheduler around the custom call.
    flops = sum(2 * padded_batch * prep.flat_params[2 * i].shape[0]
                * prep.flat_params[2 * i].shape[1]
                for i in range(prep.n_layers + 1))
    bytes_accessed = (x.size * x.dtype.itemsize
                      + padded_batch * prep.out_pad * 4
                      + sum(a.size * a.dtype.itemsize for a in prep.flat_params))
    transcendentals = padded_batch * prep.softmax_cols
    cost = pl.CostEstimate(flops=flops, transcendentals=transcendentals,
                           bytes_accessed=bytes_accessed)

    # Raise the scoped-VMEM limit only when the estimated footprint needs it
    # (defaults: 16 MiB v5e / 32 MiB v6e,v7x).
    cdt_bytes = jnp.dtype(prep.compute_dtype).itemsize
    param_bytes = sum(a.size * a.dtype.itemsize for a in prep.flat_params)
    vmem_est = (2 * param_bytes                       # worst case: double-buffered
                + 2 * tb * in_dim * cdt_bytes         # x tile, double-buffered
                + 2 * tb * prep.out_pad * 4           # out tile, double-buffered
                + 4 * tb * prep.max_width * 4)        # live activations headroom
    vmem_limit = None
    if vmem_est > (12 << 20):
        vmem_limit = int(min(max(2 * vmem_est, 32 << 20), 56 << 20))

    compiler_params = pltpu.CompilerParams(
        dimension_semantics=("parallel",),   # batch axis -> megacore sharding (v7x)
        vmem_limit_bytes=vmem_limit)

    def _call(single_buffer_params):
        if single_buffer_params:
            # Constant index_map => the block never changes; single-buffer it to
            # halve the weights' VMEM footprint (matters on v7x's 64 MiB VMEM).
            pspecs = [pl.BlockSpec(a.shape, lambda i: (0, 0),
                                   pipeline_mode=pl.Buffered(1))
                      for a in prep.flat_params]
        else:
            pspecs = [pl.BlockSpec(a.shape, lambda i: (0, 0))
                      for a in prep.flat_params]
        return pl.pallas_call(
            kernel,
            out_shape=jax.ShapeDtypeStruct((padded_batch, prep.out_pad), jnp.float32),
            grid=grid,
            in_specs=[x_spec] + pspecs,
            out_specs=out_spec,
            compiler_params=compiler_params,
            cost_estimate=cost,
        )(x, *prep.flat_params)

    try:
        out = _call(True)
    except Exception:
        # Fallback: default double-buffering if Buffered(1) is unsupported here.
        out = _call(False)

    return out[:batch, :prep.valid_cols]


def actor_critic_forward(x, prep, **kw):
    """Pallas-backed equivalent of a single ActorCriticNN.forward (prepared head)."""
    return mlp_forward(x, prep, **kw)


def fused_actor_critic_forward(x, prep, **kw):
    """Both heads (actor: softmax, critic: scalar) in a single pallas_call."""
    out = mlp_forward(x, prep, **kw)
    a = prep.softmax_cols
    return out[:, :a], out[:, a:a + 1]


# --------------------------------------------------------------------------- #
# Init + reference
# --------------------------------------------------------------------------- #
def init_params(key, input_size, n_layers, hidden_size, output_size):
    """Deterministic init mirroring torch.nn.Linear default (U[-1/sqrt(fan_in), +])."""
    dims = [input_size] + [hidden_size] * n_layers + [output_size]
    params = []
    for i in range(len(dims) - 1):
        fan_in, fan_out = dims[i], dims[i + 1]
        key, kw_, kb = jax.random.split(key, 3)
        bound = 1.0 / np.sqrt(fan_in)
        w = jax.random.uniform(kw_, (fan_in, fan_out), jnp.float32,
                               minval=-bound, maxval=bound)
        b = jax.random.uniform(kb, (1, fan_out), jnp.float32,
                               minval=-bound, maxval=bound)
        params.append((w, b))
    return params


def _reference_forward(x, params, output_size):
    h = x
    for i, (w, b) in enumerate(params):
        h = h @ w + b
        if i < len(params) - 1:
            h = jnp.maximum(h, 0.0)
    if output_size != 1:
        h = jax.nn.softmax(h, axis=-1)
    return h


if __name__ == "__main__":
    key = jax.random.PRNGKey(0)

    batch = 64           # auto tile -> tb=32, grid=2 (both v7x cores fed)
    input_size = 16
    n_layers = 2
    hidden_size = 32
    actor_out_size = 4
    critic_out_size = 1

    key, kx, kx2, kp_actor, kp_critic = jax.random.split(key, 5)
    x = jax.random.normal(kx, (batch, input_size), jnp.float32)

    actor_params = init_params(kp_actor, input_size, n_layers, hidden_size, actor_out_size)
    critic_params = init_params(kp_critic, input_size, n_layers, hidden_size, critic_out_size)

    # ---- init-time: fuse / pad / cast params ONCE (hoisted out of hot path) ----
    fused_prep = prepare_fused_actor_critic(actor_params, critic_params, actor_out_size)
    critic_prep = prepare_single_head(critic_params, critic_out_size)

    # ---- hot path: both heads in ONE pallas_call ----
    actor_out, critic_out = fused_actor_critic_forward(x, fused_prep)
    actor_out = jax.block_until_ready(actor_out)
    critic_out = jax.block_until_ready(critic_out)

    actor_ref = _reference_forward(x, actor_params, actor_out_size)
    critic_ref = _reference_forward(x, critic_params, critic_out_size)
    np.testing.assert_allclose(np.asarray(actor_out), np.asarray(actor_ref),
                               rtol=1e-5, atol=1e-5)
    np.testing.assert_allclose(np.asarray(critic_out), np.asarray(critic_ref),
                               rtol=1e-5, atol=1e-5)
    assert actor_out.shape == (batch, actor_out_size)
    assert critic_out.shape == (batch, critic_out_size)
    np.testing.assert_allclose(np.asarray(actor_out).sum(axis=-1), 1.0,
                               rtol=1e-5, atol=1e-5)

    # ---- single-head path (output_size==1, no softmax), ragged batch ----
    x_small = jax.random.normal(kx2, (13, input_size), jnp.float32)
    critic_only = actor_critic_forward(x_small, critic_prep)
    critic_only = jax.block_until_ready(critic_only)
    critic_small_ref = _reference_forward(x_small, critic_params, critic_out_size)
    np.testing.assert_allclose(np.asarray(critic_only), np.asarray(critic_small_ref),
                               rtol=1e-5, atol=1e-5)

    print("KERNEL_OK")
</pallas_src>

<mosaic_0001>
module attributes {stable_mosaic.version = 11 : i64} {
  func.func @_mlp_kernel(%arg0: i32, %arg1: memref<32x16xf32, #tpu.memory_space<vmem>>, %arg2: memref<16x128xf32, #tpu.memory_space<vmem>>, %arg3: memref<1x128xf32, #tpu.memory_space<vmem>>, %arg4: memref<128x128xf32, #tpu.memory_space<vmem>>, %arg5: memref<1x128xf32, #tpu.memory_space<vmem>>, %arg6: memref<128x128xf32, #tpu.memory_space<vmem>>, %arg7: memref<1x128xf32, #tpu.memory_space<vmem>>, %arg8: memref<32x128xf32, #tpu.memory_space<vmem>>) attributes {dimension_semantics = [#tpu.dimension_semantics<parallel>], iteration_bounds = array<i64: 2>, scalar_prefetch = 0 : i64, scratch_operands = 0 : i64, tpu.core_type = #tpu.core_type<tc>, window_params = [{transform_indices = @transform_0, window_bounds = array<i64: 32, 16>}, {pipeline_mode = #tpu.pipeline_mode<synchronous>, transform_indices = @transform_1, window_bounds = array<i64: 16, 128>}, {pipeline_mode = #tpu.pipeline_mode<synchronous>, transform_indices = @transform_2, window_bounds = array<i64: 1, 128>}, {pipeline_mode = #tpu.pipeline_mode<synchronous>, transform_indices = @transform_3, window_bounds = array<i64: 128, 128>}, {pipeline_mode = #tpu.pipeline_mode<synchronous>, transform_indices = @transform_4, window_bounds = array<i64: 1, 128>}, {pipeline_mode = #tpu.pipeline_mode<synchronous>, transform_indices = @transform_5, window_bounds = array<i64: 128, 128>}, {pipeline_mode = #tpu.pipeline_mode<synchronous>, transform_indices = @transform_6, window_bounds = array<i64: 1, 128>}, {transform_indices = @transform_7, window_bounds = array<i64: 32, 128>}]} {
    %c0 = arith.constant 0 : index
    %c0_0 = arith.constant 0 : index
    %0 = vector.load %arg1[%c0, %c0_0] : memref<32x16xf32, #tpu.memory_space<vmem>>, vector<32x16xf32>
    %c0_1 = arith.constant 0 : index
    %c0_2 = arith.constant 0 : index
    %1 = vector.load %arg2[%c0_1, %c0_2] : memref<16x128xf32, #tpu.memory_space<vmem>>, vector<16x128xf32>
    %c0_3 = arith.constant 0 : index
    %c0_4 = arith.constant 0 : index
    %2 = vector.load %arg3[%c0_3, %c0_4] : memref<1x128xf32, #tpu.memory_space<vmem>>, vector<1x128xf32>
    %cst = arith.constant dense<0.000000e+00> : vector<32x128xf32>
    %3 = tpu.matmul %0, %1, %cst {dimension_numbers = #tpu.dot_dimension_numbers<[1], [0], [0], [1], [0, 0, 1, 1], [], []>} : vector<32x16xf32>, vector<16x128xf32>, vector<32x128xf32> -> vector<32x128xf32>
    %4 = vector.broadcast %2 : vector<1x128xf32> to vector<32x128xf32>
    %5 = arith.addf %3, %4 : vector<32x128xf32>
    %cst_5 = arith.constant 0.000000e+00 : f32
    %6 = vector.broadcast %cst_5 : f32 to vector<32x128xf32>
    %7 = arith.maximumf %5, %6 : vector<32x128xf32>
    %c0_6 = arith.constant 0 : index
    %c0_7 = arith.constant 0 : index
    %8 = vector.load %arg4[%c0_6, %c0_7] : memref<128x128xf32, #tpu.memory_space<vmem>>, vector<128x128xf32>
    %c0_8 = arith.constant 0 : index
    %c0_9 = arith.constant 0 : index
    %9 = vector.load %arg5[%c0_8, %c0_9] : memref<1x128xf32, #tpu.memory_space<vmem>>, vector<1x128xf32>
    %cst_10 = arith.constant dense<0.000000e+00> : vector<32x128xf32>
    %10 = tpu.matmul %7, %8, %cst_10 {dimension_numbers = #tpu.dot_dimension_numbers<[1], [0], [0], [1], [0, 0, 1, 1], [], []>} : vector<32x128xf32>, vector<128x128xf32>, vector<32x128xf32> -> vector<32x128xf32>
    %11 = vector.broadcast %9 : vector<1x128xf32> to vector<32x128xf32>
    %12 = arith.addf %10, %11 : vector<32x128xf32>
    %cst_11 = arith.constant 0.000000e+00 : f32
    %13 = vector.broadcast %cst_11 : f32 to vector<32x128xf32>
    %14 = arith.maximumf %12, %13 : vector<32x128xf32>
    %c0_12 = arith.constant 0 : index
    %c0_13 = arith.constant 0 : index
    %15 = vector.load %arg6[%c0_12, %c0_13] : memref<128x128xf32, #tpu.memory_space<vmem>>, vector<128x128xf32>
    %c0_14 = arith.constant 0 : index
    %c0_15 = arith.constant 0 : index
    %16 = vector.load %arg7[%c0_14, %c0_15] : memref<1x128xf32, #tpu.memory_space<vmem>>, vector<1x128xf32>
    %cst_16 = arith.constant dense<0.000000e+00> : vector<32x128xf32>
    %17 = tpu.matmul %14, %15, %cst_16 {dimension_numbers = #tpu.dot_dimension_numbers<[1], [0], [0], [1], [0, 0, 1, 1], [], []>} : vector<32x128xf32>, vector<128x128xf32>, vector<32x128xf32> -> vector<32x128xf32>
    %18 = vector.broadcast %16 : vector<1x128xf32> to vector<32x128xf32>
    %19 = arith.addf %17, %18 : vector<32x128xf32>
    %20 = tpu.iota {dimensions = array<i32: 1>} : vector<32x128xi32>
    %c4_i32 = arith.constant 4 : i32
    %21 = vector.broadcast %c4_i32 : i32 to vector<32x128xi32>
    %22 = arith.cmpi slt, %20, %21 : vector<32x128xi32>
    %cst_17 = arith.constant 0xFF800000 : f32
    %23 = vector.broadcast %cst_17 : f32 to vector<32x128xf32>
    %24 = arith.select %22, %19, %23 : vector<32x128xi1>, vector<32x128xf32>
    %cst_18 = arith.constant dense<0xFF800000> : vector<32xf32>
    %25 = vector.multi_reduction <maximumf>, %24, %cst_18 [1] : vector<32x128xf32> to vector<32xf32>
    %26 = vector.shape_cast %25 : vector<32xf32> to vector<32x1xf32>
    %27 = vector.broadcast %26 : vector<32x1xf32> to vector<32x128xf32>
    %28 = arith.subf %19, %27 : vector<32x128xf32>
    %29 = math.exp %28 : vector<32x128xf32>
    %cst_19 = arith.constant 0.000000e+00 : f32
    %30 = vector.broadcast %cst_19 : f32 to vector<32x128xf32>
    %31 = arith.select %22, %29, %30 : vector<32x128xi1>, vector<32x128xf32>
    %cst_20 = arith.constant dense<0.000000e+00> : vector<32xf32>
    %32 = vector.multi_reduction <add>, %31, %cst_20 [1] : vector<32x128xf32> to vector<32xf32>
    %33 = vector.shape_cast %32 : vector<32xf32> to vector<32x1xf32>
    %34 = tpu.reciprocal %33 : vector<32x1xf32> -> vector<32x1xf32>
    %35 = vector.broadcast %34 : vector<32x1xf32> to vector<32x128xf32>
    %36 = arith.mulf %31, %35 : vector<32x128xf32>
    %37 = arith.select %22, %36, %19 : vector<32x128xi1>, vector<32x128xf32>
    %c0_21 = arith.constant 0 : index
    %c0_22 = arith.constant 0 : index
    %38 = vector.load %arg8[%c0_21, %c0_22] : memref<32x128xf32, #tpu.memory_space<vmem>>, vector<32x128xf32>
    tpu.vector_store %arg8[%c0_21, %c0_22], %37 {strides = array<i32>} : memref<32x128xf32, #tpu.memory_space<vmem>>, vector<32x128xf32>,
    return
  }
  func.func @transform_0(%arg0: i32) -> (i32, i32) {
    %c0_i32 = arith.constant 0 : i32
    %c0_i32_0 = arith.constant 0 : i32
    return %arg0, %c0_i32 : i32, i32
  }
  func.func @transform_1(%arg0: i32) -> (i32, i32) {
    %c0_i32 = arith.constant 0 : i32
    %c0_i32_0 = arith.constant 0 : i32
    %c0_i32_1 = arith.constant 0 : i32
    return %c0_i32, %c0_i32_0 : i32, i32
  }
  func.func @transform_2(%arg0: i32) -> (i32, i32) {
    %c0_i32 = arith.constant 0 : i32
    %c0_i32_0 = arith.constant 0 : i32
    %c0_i32_1 = arith.constant 0 : i32
    return %c0_i32, %c0_i32_0 : i32, i32
  }
  func.func @transform_3(%arg0: i32) -> (i32, i32) {
    %c0_i32 = arith.constant 0 : i32
    %c0_i32_0 = arith.constant 0 : i32
    %c0_i32_1 = arith.constant 0 : i32
    return %c0_i32, %c0_i32_0 : i32, i32
  }
  func.func @transform_4(%arg0: i32) -> (i32, i32) {
    %c0_i32 = arith.constant 0 : i32
    %c0_i32_0 = arith.constant 0 : i32
    %c0_i32_1 = arith.constant 0 : i32
    return %c0_i32, %c0_i32_0 : i32, i32
  }
  func.func @transform_5(%arg0: i32) -> (i32, i32) {
    %c0_i32 = arith.constant 0 : i32
    %c0_i32_0 = arith.constant 0 : i32
    %c0_i32_1 = arith.constant 0 : i32
    return %c0_i32, %c0_i32_0 : i32, i32
  }
  func.func @transform_6(%arg0: i32) -> (i32, i32) {
    %c0_i32 = arith.constant 0 : i32
    %c0_i32_0 = arith.constant 0 : i32
    %c0_i32_1 = arith.constant 0 : i32
    return %c0_i32, %c0_i32_0 : i32, i32
  }
  func.func @transform_7(%arg0: i32) -> (i32, i32) {
    %c0_i32 = arith.constant 0 : i32
    %c0_i32_0 = arith.constant 0 : i32
    return %arg0, %c0_i32 : i32, i32
  }
}

module attributes {stable_mosaic.version = 11 : i64} {
  func.func @_mlp_kernel(%arg0: i32, %arg1: memref<32x16xf32, #tpu.memory_space<vmem>>, %arg2: memref<16x128xf32, #tpu.memory_space<vmem>>, %arg3: memref<1x128xf32, #tpu.memory_space<vmem>>, %arg4: memref<128x128xf32, #tpu.memory_space<vmem>>, %arg5: memref<1x128xf32, #tpu.memory_space<vmem>>, %arg6: memref<128x128xf32, #tpu.memory_space<vmem>>, %arg7: memref<1x128xf32, #tpu.memory_space<vmem>>, %arg8: memref<32x128xf32, #tpu.memory_space<vmem>>) attributes {dimension_semantics = [#tpu.dimension_semantics<parallel>], iteration_bounds = array<i64: 2>, scalar_prefetch = 0 : i64, scratch_operands = 0 : i64, tpu.core_type = #tpu.core_type<tc>, window_params = [{transform_indices = @transform_0, window_bounds = array<i64: 32, 16>}, {pipeline_mode = #tpu.pipeline_mode<synchronous>, transform_indices = @transform_1, window_bounds = array<i64: 16, 128>}, {pipeline_mode = #tpu.pipeline_mode<synchronous>, transform_indices = @transform_2, window_bounds = array<i64: 1, 128>}, {pipeline_mode = #tpu.pipeline_mode<synchronous>, transform_indices = @transform_3, window_bounds = array<i64: 128, 128>}, {pipeline_mode = #tpu.pipeline_mode<synchronous>, transform_indices = @transform_4, window_bounds = array<i64: 1, 128>}, {pipeline_mode = #tpu.pipeline_mode<synchronous>, transform_indices = @transform_5, window_bounds = array<i64: 128, 128>}, {pipeline_mode = #tpu.pipeline_mode<synchronous>, transform_indices = @transform_6, window_bounds = array<i64: 1, 128>}, {transform_indices = @transform_7, window_bounds = array<i64: 32, 128>}]} {
    %c0 = arith.constant 0 : index
    %c0_0 = arith.constant 0 : index
    %0 = vector.load %arg1[%c0, %c0_0] : memref<32x16xf32, #tpu.memory_space<vmem>>, vector<32x16xf32>
    %c0_1 = arith.constant 0 : index
    %c0_2 = arith.constant 0 : index
    %1 = vector.load %arg2[%c0_1, %c0_2] : memref<16x128xf32, #tpu.memory_space<vmem>>, vector<16x128xf32>
    %c0_3 = arith.constant 0 : index
    %c0_4 = arith.constant 0 : index
    %2 = vector.load %arg3[%c0_3, %c0_4] : memref<1x128xf32, #tpu.memory_space<vmem>>, vector<1x128xf32>
    %cst = arith.constant dense<0.000000e+00> : vector<32x128xf32>
    %3 = tpu.matmul %0, %1, %cst {dimension_numbers = #tpu.dot_dimension_numbers<[1], [0], [0], [1], [0, 0, 1, 1], [], []>} : vector<32x16xf32>, vector<16x128xf32>, vector<32x128xf32> -> vector<32x128xf32>
    %4 = vector.broadcast %2 : vector<1x128xf32> to vector<32x128xf32>
    %5 = arith.addf %3, %4 : vector<32x128xf32>
    %cst_5 = arith.constant 0.000000e+00 : f32
    %6 = vector.broadcast %cst_5 : f32 to vector<32x128xf32>
    %7 = arith.maximumf %5, %6 : vector<32x128xf32>
    %c0_6 = arith.constant 0 : index
    %c0_7 = arith.constant 0 : index
    %8 = vector.load %arg4[%c0_6, %c0_7] : memref<128x128xf32, #tpu.memory_space<vmem>>, vector<128x128xf32>
    %c0_8 = arith.constant 0 : index
    %c0_9 = arith.constant 0 : index
    %9 = vector.load %arg5[%c0_8, %c0_9] : memref<1x128xf32, #tpu.memory_space<vmem>>, vector<1x128xf32>
    %cst_10 = arith.constant dense<0.000000e+00> : vector<32x128xf32>
    %10 = tpu.matmul %7, %8, %cst_10 {dimension_numbers = #tpu.dot_dimension_numbers<[1], [0], [0], [1], [0, 0, 1, 1], [], []>} : vector<32x128xf32>, vector<128x128xf32>, vector<32x128xf32> -> vector<32x128xf32>
    %11 = vector.broadcast %9 : vector<1x128xf32> to vector<32x128xf32>
    %12 = arith.addf %10, %11 : vector<32x128xf32>
    %cst_11 = arith.constant 0.000000e+00 : f32
    %13 = vector.broadcast %cst_11 : f32 to vector<32x128xf32>
    %14 = arith.maximumf %12, %13 : vector<32x128xf32>
    %c0_12 = arith.constant 0 : index
    %c0_13 = arith.constant 0 : index
    %15 = vector.load %arg6[%c0_12, %c0_13] : memref<128x128xf32, #tpu.memory_space<vmem>>, vector<128x128xf32>
    %c0_14 = arith.constant 0 : index
    %c0_15 = arith.constant 0 : index
    %16 = vector.load %arg7[%c0_14, %c0_15] : memref<1x128xf32, #tpu.memory_space<vmem>>, vector<1x128xf32>
    %cst_16 = arith.constant dense<0.000000e+00> : vector<32x128xf32>
    %17 = tpu.matmul %14, %15, %cst_16 {dimension_numbers = #tpu.dot_dimension_numbers<[1], [0], [0], [1], [0, 0, 1, 1], [], []>} : vector<32x128xf32>, vector<128x128xf32>, vector<32x128xf32> -> vector<32x128xf32>
    %18 = vector.broadcast %16 : vector<1x128xf32> to vector<32x128xf32>
    %19 = arith.addf %17, %18 : vector<32x128xf32>
    %20 = tpu.iota {dimensions = array<i32: 1>} : vector<32x128xi32>
    %c4_i32 = arith.constant 4 : i32
    %21 = vector.broadcast %c4_i32 : i32 to vector<32x128xi32>
    %22 = arith.cmpi slt, %20, %21 : vector<32x128xi32>
    %cst_17 = arith.constant 0xFF800000 : f32
    %23 = vector.broadcast %cst_17 : f32 to vector<32x128xf32>
    %24 = arith.select %22, %19, %23 : vector<32x128xi1>, vector<32x128xf32>
    %cst_18 = arith.constant dense<0xFF800000> : vector<32xf32>
    %25 = vector.multi_reduction <maximumf>, %24, %cst_18 [1] : vector<32x128xf32> to vector<32xf32>
    %26 = vector.shape_cast %25 : vector<32xf32> to vector<32x1xf32>
    %27 = vector.broadcast %26 : vector<32x1xf32> to vector<32x128xf32>
    %28 = arith.subf %19, %27 : vector<32x128xf32>
    %29 = math.exp %28 : vector<32x128xf32>
    %cst_19 = arith.constant 0.000000e+00 : f32
    %30 = vector.broadcast %cst_19 : f32 to vector<32x128xf32>
    %31 = arith.select %22, %29, %30 : vector<32x128xi1>, vector<32x128xf32>
    %cst_20 = arith.constant dense<0.000000e+00> : vector<32xf32>
    %32 = vector.multi_reduction <add>, %31, %cst_20 [1] : vector<32x128xf32> to vector<32xf32>
    %33 = vector.shape_cast %32 : vector<32xf32> to vector<32x1xf32>
    %34 = tpu.reciprocal %33 : vector<32x1xf32> -> vector<32x1xf32>
    %35 = vector.broadcast %34 : vector<32x1xf32> to vector<32x128xf32>
    %36 = arith.mulf %31, %35 : vector<32x128xf32>
    %37 = arith.select %22, %36, %19 : vector<32x128xi1>, vector<32x128xf32>
    %c0_21 = arith.constant 0 : index
    %c0_22 = arith.constant 0 : index
    %38 = vector.load %arg8[%c0_21, %c0_22] : memref<32x128xf32, #tpu.memory_space<vmem>>, vector<32x128xf32>
    tpu.vector_store %arg8[%c0_21, %c0_22], %37 {strides = array<i32>} : memref<32x128xf32, #tpu.memory_space<vmem>>, vector<32x128xf32>,
    return
  }
  func.func @transform_0(%arg0: i32) -> (i32, i32) {
    %c0_i32 = arith.constant 0 : i32
    %c0_i32_0 = arith.constant 0 : i32
    return %arg0, %c0_i32 : i32, i32
  }
  func.func @transform_1(%arg0: i32) -> (i32, i32) {
    %c0_i32 = arith.constant 0 : i32
    %c0_i32_0 = arith.constant 0 : i32
    %c0_i32_1 = arith.constant 0 : i32
    return %c0_i32, %c0_i32_0 : i32, i32
  }
  func.func @transform_2(%arg0: i32) -> (i32, i32) {
    %c0_i32 = arith.constant 0 : i32
    %c0_i32_0 = arith.constant 0 : i32
    %c0_i32_1 = arith.constant 0 : i32
    return %c0_i32, %c0_i32_0 : i32, i32
  }
  func.func @transform_3(%arg0: i32) -> (i32, i32) {
    %c0_i32 = arith.constant 0 : i32
    %c0_i32_0 = arith.constant 0 : i32
    %c0_i32_1 = arith.constant 0 : i32
    return %c0_i32, %c0_i32_0 : i32, i32
  }
  func.func @transform_4(%arg0: i32) -> (i32, i32) {
    %c0_i32 = arith.constant 0 : i32
    %c0_i32_0 = arith.constant 0 : i32
    %c0_i32_1 = arith.constant 0 : i32
    return %c0_i32, %c0_i32_0 : i32, i32
  }
  func.func @transform_5(%arg0: i32) -> (i32, i32) {
    %c0_i32 = arith.constant 0 : i32
    %c0_i32_0 = arith.constant 0 : i32
    %c0_i32_1 = arith.constant 0 : i32
    return %c0_i32, %c0_i32_0 : i32, i32
  }
  func.func @transform_6(%arg0: i32) -> (i32, i32) {
    %c0_i32 = arith.constant 0 : i32
    %c0_i32_0 = arith.constant 0 : i32
    %c0_i32_1 = arith.constant 0 : i32
    return %c0_i32, %c0_i32_0 : i32, i32
  }
  func.func @transform_7(%arg0: i32) -> (i32, i32) {
    %c0_i32 = arith.constant 0 : i32
    %c0_i32_0 = arith.constant 0 : i32
    return %arg0, %c0_i32 : i32, i32
  }
}

</mosaic_0001>

<bundles_post_ra>
// kernel: tpu_custom_call.1
= control target key start
LH: loop header
LB: loop body
LE: loop exit
PB: predicated region body
PF: predicated region fallthrough
CT: control target
= control target key end

     0   :  { %12 = vsyncpa [#allocation3], 0  ;;  %s1401_s0 = inlined_call_operand.vmem [shape: f32[64,16], index: 0, kind: input, shape index: {}]   ;;  %s1402_s1 = inlined_call_operand.vmem [shape: f32[16,128], index: 1, kind: input, shape index: {}]   ;;  %s1403_s2 = inlined_call_operand.vmem [shape: f32[1,128], index: 2, kind: input, shape index: {}]   ;;  %s1404_s3 = inlined_call_operand.hbm [shape: f32[128,128], index: 3, kind: input, shape index: {}]   ;;  %s1405_s4 = inlined_call_operand.vmem [shape: f32[1,128], index: 4, kind: input, shape index: {}]   ;;  %s1406_s5 = inlined_call_operand.hbm [shape: f32[128,128], index: 5, kind: input, shape index: {}]   ;;  %s1407_s6 = inlined_call_operand.vmem [shape: f32[1,128], index: 6, kind: input, shape index: {}]   ;;  %s1408_s7 = inlined_call_operand.hbm [shape: f32[64,128], index: 7, kind: output, shape index: {}]  }
   0x1   :  { %13 = vsyncpa [#allocation6], 0 }
   0x2   :  { %14 = vsyncpa [#allocation4], 0 }
   0x3   :  { %16 = vsyncpa [#allocation4 + $0x1], 0  ;;  %s1203_s24 = smov 0   ;;  %s1205_s25 = smov 0  }
   0x4   :  { %s1207_s26 = smov 0   ;;  %s1209_s27 = smov 0  }
   0x5 LB: > { %s1224_s28 = sadd.s32 4294967295, %s1154_s27   ;;  %s798_s29 = sadd.s32 4294967294, %s1154_s27   ;;  %s1154_s27 = sphi %s1209_s27, %s1422_s27   ;;  %s1150_s26 = sphi %s1207_s26, %s1421_s26   ;;  %s1146_s25 = sphi %s1205_s25, %s1420_s25   ;;  %s1142_s24 = sphi %s1203_s24, %s1419_s24  }
   0x6   : > { %s1228_s30 = sadd.s32 1, %s1154_s27   ;;  %s181_s8 = sadd.s32 1, %s1150_s26 }
   0x7   : > { %s178_s9 = ssub.s32 %s1154_s27, %s1228_s30  ;;  %p191_p0 = scmp.ne.s32.totalorder %s1150_s26, %s1146_s25 }
   0x8   : > { %p179_p1 = scmp.eq.s32.totalorder %s178_s9, 0  ;;  %p192_p2 = scmp.eq.s32.totalorder %s1224_s28, 1 }
   0x9   : > { %p197_p3 = scmp.ne.s32.totalorder %s1146_s25, %s1142_s24  ;;  %p198_p4 = scmp.eq.s32.totalorder %s798_s29, 1 }
   0xa   : > { %s1239_s10 = scalar_select %p179_p1, %s1150_s26, %s181_s8  }
   0xb   : > { %p1241_p5 = por %p192_p2, %p191_p0  ;;  %p1245_p6 = por %p198_p4, %p197_p3 }
   0xc   : > { %p799_p7 = scmp.ge.s32.totalorder %s1154_s27, 1  ;;  %p205_p8 = scmp.lt.s32.totalorder %s1154_s27, 3 }
   0xd   : > { %s1411_s12 = scalar_select %p1245_p6, 1, 0 }
   0xe   : > { %p1409_p9 = scmp.eq.s32.totalorder %s1224_s28, 0  ;;  %p1252_p10 = pnand %p799_p7, %p205_p8 }
   0xf   : > { %s1156_s14 = smov [#allocation2]   ;;  %s1157_s17 = smov [#allocation5]  }
  0x10   : > { %s223_s15 = sshll.u32 %s1156_s14, 4  ;;  %p964_p11 = pneg %p1252_p10  ;;  %s224_s15 = int_to_ptr.vmem [resolvable:$true] %s223_s15 }
  0x11   : > { %s239_s18 = sshll.u32 %s1157_s17, 4  ;;  %s1045_s19 = scalar_lea.vmem %s224_s15, 2048  ;;  %s240_s18 = int_to_ptr.vmem [resolvable:$true] %s239_s18 }
  0x12   : > { %p1260_p12 = pnand %p1409_p9, %p964_p11  ;;  %p1046_p0 = scmp.ne.s32.totalorder %s224_s15, %s1045_s19 }
  0x13   : > { %p1053_p3 = scmp.lt.s32.totalorder %s224_s15, %s224_s15  ;;  %p1054_p4 = scmp.lt.s32.totalorder %s1045_s19, %s1045_s19 }
  0x14   : > { %p1036_p13 = pneg %p1260_p12 }
  0x15   : > { %p1055_p7 = por %p1054_p4, %p1053_p3 }
  0x16   : > { %p1048_p1 = pnand %p1046_p0, %p1036_p13 }
  0x18   : > { %p1049_p2 = pneg %p1048_p1 }
  0x1a   : > { %p1056_p8 = pnand %p1055_p7, %p1049_p2 }
  0x1c   : > { %1059 = shalt.err (!%p1056_p8)
}
  0x1d   : > { %s1158_s20 = smov 128   ;;  %s1159_s21 = smov 8  }
  0x1e   : > { %967 = dma.hbm_to_vmem [thread:$0]  (!%p1260_p12), %s1404_s3, 2048, %s224_s15, [#allocation3], %s1158_s20, %s1158_s20, %s1159_s21  }
  0x1f   : > { %s1071_s29 = scalar_lea.vmem %s240_s18, 2048  ;;  %p1079_p9 = scmp.lt.s32.totalorder %s240_s18, %s240_s18 }
  0x20   : > { %p1072_p11 = scmp.ne.s32.totalorder %s240_s18, %s1071_s29  ;;  %p1080_p6 = scmp.lt.s32.totalorder %s1071_s29, %s1071_s29 }
  0x22   : > { %p1074_p0 = pnand %p1072_p11, %p1036_p13  ;;  %p1081_p3 = por %p1080_p6, %p1079_p9 }
  0x24   : > { %p1075_p1 = pneg %p1074_p0 }
  0x26   : > { %p1082_p2 = pnand %p1081_p3, %p1075_p1 }
  0x28   : > { %1085 = shalt.err (!%p1082_p2)
}
  0x29   : > { %970 = dma.hbm_to_vmem [thread:$0]  (!%p1260_p12), %s1406_s5, 2048, %s240_s18, [#allocation6], %s1158_s20, %s1158_s20, %s1159_s21  }
  0x2a   : > { %267 = sbr.rel (%p1252_p10) target bundleno = 992 (0x3e0), region = 48  ;;  %p1414_p4 = scmp.eq.s32.totalorder (!%p1252_p10), %s1224_s28, 0 }
  0x2f   : > { %1129 = dma.done.wait (%p1414_p4), [#allocation3], 2048   ;;  %p1415_p13 = pmov %p1414_p4 }
  0x30   : > { %p1416_p7 = pmov %p1414_p4 }
  0x31   : > { %1131 = vsyncadd (%p1415_p13), [#allocation3], 4294965248 }
  0x32   : > { %1133 = dma.done.wait (%p1416_p7), [#allocation6], 2048   ;;  %p1417_p6 = pmov %p1414_p4 }
  0x33   : > { %s807_s14 = sshll.u32 %s1224_s28, 2  ;;  %vm323_vm0 = vcmask 130048   ;;  %v315_v0 = vld [vmem:[%s1402_s1 + $0x8] sm:$0xff]  ;;  %v314_v1 = vld [vmem:[%s1402_s1] sm:$0xff]  ;;  %v440_v4 = vld [vmem:[#allocation2 + $0x78] sm:$0xff]  ;;  %s1160_s23 = smov [#allocation7]  }
  0x34   : > { %1135 = vsyncadd (%p1417_p6), [#allocation6], 4294965248  ;;  %p304_p9 = scmp.lt.s32.totalorder %s807_s14, 7  ;;  %868 = vmatprep.subr.mxu0 %v315_v0  ;;  %v439_v5 = vld [vmem:[#allocation2 + $0x70] sm:$0xff]  ;;  %878 = vmatprep.subr.mxu1 %v440_v4  ;;  %v438_v7 = vld [vmem:[#allocation2 + $0x68] sm:$0xff]  ;;  %s1090_s29 = sshll.u32 %s1160_s23, 4  ;;  %s1091_s29 = int_to_ptr.vmem [resolvable:$false] %s1090_s29 }
  0x35   : > { %869 = vmatpush3.msra.mxu0 %v315_v0  ;;  %879 = vmatpush3.msra.mxu1 %v440_v4  ;;  %v437_v9 = vld [vmem:[#allocation2 + $0x60] sm:$0xff]  ;;  %v436_v10 = vld [vmem:[#allocation2 + $0x58] sm:$0xff]  ;;  %v435_v11 = vld [vmem:[#allocation2 + $0x50] sm:$0xff]  ;;  %v645_v0 = vlaneseq  ;;  %s1092_s8 = scalar_lea.vmem %s1091_s29, 1024 }
  0x36   : > { %s1424_s14 = smov (!%p304_p9, %s807_s14), 7  ;;  %870 = vmatprep.subr.mxu0 %v314_v1  ;;  %880 = vmatprep.subr.mxu1 %v439_v5  ;;  %v434_v12 = vld [vmem:[#allocation2 + $0x48] sm:$0xff]  ;;  %v433_v13 = vld [vmem:[#allocation2 + $0x40] sm:$0xff]  ;;  %v432_v14 = vld [vmem:[#allocation2 + $0x38] sm:$0xff] }
  0x37   : > { %s808_s15 = sshll.u32 %s1424_s14, 3  ;;  %871 = vmatpush3.msra.mxu0 %v314_v1  ;;  %881 = vmatpush3.msra.mxu1 %v439_v5  ;;  %v431_v15 = vld [vmem:[#allocation2 + $0x30] sm:$0xff]  ;;  %v430_v16 = vld [vmem:[#allocation2 + $0x28] sm:$0xff]  ;;  %v429_v17 = vld [vmem:[#allocation2 + $0x20] sm:$0xff] }
  0x38   : > { %s307_s17 = scalar_lea.vmem %s1401_s0, %s808_s15  ;;  %882 = vmatprep.subr.mxu1 %v438_v7  ;;  %v428_v18 = vld [vmem:[#allocation2 + $0x18] sm:$0xff]  ;;  %v427_v19 = vld [vmem:[#allocation2 + $0x10] sm:$0xff]  ;;  %v426_v20 = vld [vmem:[#allocation2 + $0x8] sm:$0xff]  ;;  %s300_s15 = sand.u32 1, %s1146_s25  }
  0x39   : > { %v310_v2 = vld [vmem:[%s307_s17] sm:$0xff]  ;;  %v311_v3 = vld [vmem:[%s307_s17 + $0x8] sm:$0xff]  ;;  %v312_v6 = vld [vmem:[%s307_s17 + $0x10] sm:$0xff]  ;;  %883 = vmatpush3.msra.mxu1 %v438_v7  ;;  %s806_s13 = sshll.u32 %s300_s15, 5 }
  0x3a   : > { %872 = vmatprep.mubr.msk.f32.mxu0 %vm323_vm0, %v310_v2  ;;  %v313_v8 = vld [vmem:[%s307_s17 + $0x18] sm:$0xff]  ;;  %884 = vmatprep.subr.mxu1 %v437_v9  ;;  %v425_v21 = vld [vmem:[#allocation2] sm:$0xff]  ;;  %v551_v23 = vld [vmem:[#allocation5 + $0x70] sm:$0xff]  ;;  %v1312_v2 = vand.u32 127, %v645_v0  ;;  %s302_s16 = scalar_lea.vmem [#allocation7], %s806_s13  ;;  %s821_s17 = sshll.u32 %s1224_s28, 9 }
  0x3b   : > { %873 = vmatmul.mubr.msk.f32.vlgmr.msra.gmra.mxu0 %vm323_vm0, %v311_v3  ;;  %885 = vmatpush3.msra.mxu1 %v437_v9  ;;  %v552_v22 = vld [vmem:[#allocation5 + $0x78] sm:$0xff]  ;;  %v550_v24 = vld [vmem:[#allocation5 + $0x68] sm:$0xff]  ;;  %v549_v25 = vld [vmem:[#allocation5 + $0x60] sm:$0xff]  ;;  %s714_s18 = sshll.u32 %s302_s16, 4  ;;  %s1354_s21 = scalar_lea.hbm %s1408_s7, %s821_s17  ;;  %s1356_s18 = int_to_ptr.vmem [resolvable:$true] %s714_s18 }
  0x3c   : > { %875 = vmatprep.mubr.msk.f32.mxu0 %vm323_vm0, %v312_v6  ;;  %886 = vmatprep.subr.mxu1 %v436_v10  ;;  %v548_v26 = vld [vmem:[#allocation5 + $0x58] sm:$0xff]  ;;  %v547_v27 = vld [vmem:[#allocation5 + $0x50] sm:$0xff]  ;;  %v546_v28 = vld [vmem:[#allocation5 + $0x48] sm:$0xff]  ;;  %vm647_vm1 = vcmp.lt.s32.totalorder %v1312_v2, 4  ;;  %s1361_s28 = scalar_lea.sflag [#allocation4], %s300_s15  ;;  %s1086_s22 = scalar_lea.vmem %s1356_s18, 512 }
  0x3d   : > { %887 = vmatpush3.msra.mxu1 %v436_v10  ;;  %916 = vmatprep.subr.mxu0 %v552_v22  ;;  %v545_v29 = vld [vmem:[#allocation5 + $0x40] sm:$0xff]  ;;  %v544_v30 = vld [vmem:[#allocation5 + $0x38] sm:$0xff]  ;;  %v543_v31 = vld [vmem:[#allocation5 + $0x30] sm:$0xff]  ;;  %p1087_p10 = scmp.ne.s32.totalorder %s1356_s18, %s1086_s22  ;;  %p1093_p11 = scmp.lt.s32.totalorder %s1356_s18, %s1091_s29 }
  0x3e   : > { %888 = vmatprep.subr.mxu1 %v435_v11  ;;  %917 = vmatpush3.msra.mxu0 %v552_v22  ;;  %v542_v32 = vld [vmem:[#allocation5 + $0x28] sm:$0xff]  ;;  %v541_v33 = vld [vmem:[#allocation5 + $0x20] sm:$0xff]  ;;  %v540_v47 = vld [vmem:[#allocation5 + $0x18] sm:$0xff]  ;;  %p1094_p0 = scmp.lt.s32.totalorder %s1092_s8, %s1086_s22 }
  0x3f   : > { %876 = vmatmul.mubr.msk.f32.gmra.mxu0 %vm323_vm0, %v313_v8  ;;  %889 = vmatpush3.msra.mxu1 %v435_v11  ;;  %v809_v34 = vld [vmem:[%s1403_s2] ss:$0 sm:$0xff]  ;;  %v539_v48 = vld [vmem:[#allocation5 + $0x10] sm:$0xff]  ;;  %v538_v49 = vld [vmem:[#allocation5 + $0x8] sm:$0xff]  ;;  %p1088_p12 = pnand %p1087_p10, %p1241_p5 }
  0x40   : > { %890 = vmatprep.subr.mxu1 %v434_v12  ;;  %918 = vmatprep.subr.mxu0 %v551_v23  ;;  %v537_v50 = vld [vmem:[#allocation5] sm:$0xff]  ;;  %p1095_p1 = por %p1094_p0, %p1093_p11 }
  0x41   : > { %891 = vmatpush3.msra.mxu1 %v434_v12  ;;  %919 = vmatpush3.msra.mxu0 %v551_v23  ;;  %v814_v51 = vld [vmem:[%s1405_s4] ss:$0 sm:$0xff]  ;;  %p1089_p8 = pneg %p1088_p12 }
  0x42   : > { %892 = vmatprep.subr.mxu1 %v433_v13  ;;  %920 = vmatprep.subr.mxu0 %v550_v24  ;;  %v815_v3 = vld [vmem:[%s1407_s6] ss:$0 sm:$0xff] }
  0x43   : > { %893 = vmatpush3.msra.mxu1 %v433_v13  ;;  %921 = vmatpush3.msra.mxu0 %v550_v24  ;;  %p1096_p3 = pnand %p1095_p1, %p1089_p8 }
  0x44   : > { %894 = vmatprep.subr.mxu1 %v432_v14  ;;  %922 = vmatprep.subr.mxu0 %v549_v25 }
  0x45   : > { %895 = vmatpush3.msra.mxu1 %v432_v14  ;;  %923 = vmatpush3.msra.mxu0 %v549_v25 }
  0x46   : > { %896 = vmatprep.subr.mxu1 %v431_v15  ;;  %924 = vmatprep.subr.mxu0 %v548_v26 }
  0x47   : > { %897 = vmatpush3.msra.mxu1 %v431_v15  ;;  %925 = vmatpush3.msra.mxu0 %v548_v26 }
  0x48   : > { %898 = vmatprep.subr.mxu1 %v430_v16  ;;  %926 = vmatprep.subr.mxu0 %v547_v27 }
  0x49   : > { %899 = vmatpush3.msra.mxu1 %v430_v16  ;;  %927 = vmatpush3.msra.mxu0 %v547_v27 }
  0x4a   : > { %900 = vmatprep.subr.mxu1 %v429_v17  ;;  %928 = vmatprep.subr.mxu0 %v546_v28 }
  0x4b   : > { %901 = vmatpush3.msra.mxu1 %v429_v17  ;;  %929 = vmatpush3.msra.mxu0 %v546_v28 }
  0x4c   : > { %902 = vmatprep.subr.mxu1 %v428_v18  ;;  %930 = vmatprep.subr.mxu0 %v545_v29 }
  0x4d   : > { %903 = vmatpush3.msra.mxu1 %v428_v18  ;;  %931 = vmatpush3.msra.mxu0 %v545_v29 }
  0x4e   : > { %904 = vmatprep.subr.mxu1 %v427_v19  ;;  %932 = vmatprep.subr.mxu0 %v544_v30 }
  0x4f   : > { %905 = vmatpush3.msra.mxu1 %v427_v19  ;;  %933 = vmatpush3.msra.mxu0 %v544_v30 }
  0x50   : > { %906 = vmatprep.subr.mxu1 %v426_v20  ;;  %934 = vmatprep.subr.mxu0 %v543_v31 }
  0x51   : > { %907 = vmatpush3.msra.mxu1 %v426_v20  ;;  %935 = vmatpush3.msra.mxu0 %v543_v31 }
  0x52   : > { %908 = vmatprep.subr.mxu1 %v425_v21  ;;  %936 = vmatprep.subr.mxu0 %v542_v32 }
  0x53   : > { %909 = vmatpush3.msra.mxu1 %v425_v21  ;;  %937 = vmatpush3.msra.mxu0 %v542_v32 }
  0x54   : > { %938 = vmatprep.subr.mxu0 %v541_v33 }
  0x55   : > { %939 = vmatpush3.msra.mxu0 %v541_v33 }
  0x56   : > { %940 = vmatprep.subr.mxu0 %v540_v47 }
  0x57   : > { %941 = vmatpush3.msra.mxu0 %v540_v47 }
  0x58   : > { %942 = vmatprep.subr.mxu0 %v539_v48 }
  0x59   : > { %943 = vmatpush3.msra.mxu0 %v539_v48 }
  0x5a   : > { %944 = vmatprep.subr.mxu0 %v538_v49 }
  0x5b   : > { %945 = vmatpush3.msra.mxu0 %v538_v49 }
  0x5c   : > { %946 = vmatprep.subr.mxu0 %v537_v50 }
  0x5d   : > { %947 = vmatpush3.msra.mxu0 %v537_v50 }
  0xfb   : > { %v874_v35 = vpop.f32.mrf.mxu0 }
  0xfc   : > { %v408_v36 = vadd.f32 %v874_v35, %v809_v34 }
  0xfd   : > { %v402_v37 = vpop.f32.mrf.mxu0 }
  0xfe   : > { %v403_v38 = vadd.f32 %v809_v34, %v402_v37  ;;  %v422_v41 = vmax.f32 %v408_v36, 0.0 }
  0xff   : > { %v877_v39 = vpop.f32.mrf.mxu0 }
 0x100   : > { %v421_v40 = vmax.f32 %v403_v38, 0.0  ;;  %v418_v42 = vadd.f32 %v877_v39, %v809_v34 }
 0x101   : > { %v412_v43 = vpop.f32.mrf.mxu0 }
 0x102   : > { %v413_v44 = vadd.f32 %v809_v34, %v412_v43  ;;  %910 = vmatprep.mubr.f32.mxu1 %v421_v40  ;;  %v424_v46 = vmax.f32 %v418_v42, 0.0 }
 0x103   : > { %911 = vmatmul.mubr.f32.vlgmr.msra.gmra.mxu1 %v422_v41 }
 0x104   : > { %v423_v45 = vmax.f32 %v413_v44, 0.0 }
 0x106   : > { %913 = vmatprep.mubr.f32.mxu1 %v423_v45 }
 0x107   : > { %914 = vmatmul.mubr.f32.gmra.mxu1 %v424_v46 }
 0x1c3   : > { %v912_v52 = vpop.f32.mrf.mxu1 }
 0x1c4   : > { %v520_v53 = vadd.f32 %v912_v52, %v814_v51 }
 0x1c5   : > { %v514_v54 = vpop.f32.mrf.mxu1 }
 0x1c6   : > { %v515_v55 = vadd.f32 %v814_v51, %v514_v54  ;;  %v534_v58 = vmax.f32 %v520_v53, 0.0 }
 0x1c7   : > { %v915_v56 = vpop.f32.mrf.mxu1 }
 0x1c8   : > { %v533_v57 = vmax.f32 %v515_v55, 0.0  ;;  %v530_v59 = vadd.f32 %v915_v56, %v814_v51 }
 0x1c9   : > { %v524_v60 = vpop.f32.mrf.mxu1 }
 0x1ca   : > { %v525_v61 = vadd.f32 %v814_v51, %v524_v60  ;;  %948 = vmatprep.mubr.f32.mxu0 %v533_v57  ;;  %v536_v63 = vmax.f32 %v530_v59, 0.0 }
 0x1cb   : > { %949 = vmatmul.mubr.f32.vlgmr.msra.gmra.mxu0 %v534_v58 }
 0x1cc   : > { %v535_v62 = vmax.f32 %v525_v61, 0.0 }
 0x1ce   : > { %951 = vmatprep.mubr.f32.mxu0 %v535_v62 }
 0x1cf   : > { %952 = vmatmul.mubr.f32.gmra.mxu0 %v536_v63 }
 0x28b   : > { %v950_v1 = vpop.f32.mrf.mxu0 }
 0x28c   : > { %v1318_v7 = vadd.f32 %v950_v1, %v815_v3 }
 0x28d   : > { %v626_v4 = vpop.f32.mrf.mxu0 }
 0x28e   : > { %v627_v5 = vadd.f32 %v815_v3, %v626_v4  ;;  %v649_v13 = vsel %vm647_vm1, %v1318_v7, -inf }
 0x28f   : > { %v953_v6 = vpop.f32.mrf.mxu0 }
 0x290   : > { %v648_v8 = vsel %vm647_vm1, %v627_v5, -inf  ;;  %v1322_v11 = vadd.f32 %v953_v6, %v815_v3 }
 0x291   : > { %v636_v9 = vpop.f32.mrf.mxu0  ;;  %652 = vmax.xlane.f32.xlu0 %v648_v8 }
 0x292   : > { %v637_v10 = vadd.f32 %v815_v3, %v636_v9  ;;  %v651_v14 = vsel %vm647_vm1, %v1322_v11, -inf }
 0x294   : > { %v650_v12 = vsel %vm647_vm1, %v637_v10, -inf }
 0x295   : > { %656 = vmax.xlane.f32.xlu1 %v650_v12  ;;  %654 = vmax.xlane.f32.xlu0 %v649_v13 }
 0x299   : > { %658 = vmax.xlane.f32.xlu1 %v651_v14 }
 0x31a   : > { %v653_v15 = vpop.xlane.xlu0 %652 }
 0x31b   : > { %v660_v16 = vsub.f32 %v627_v5, %v653_v15 }
 0x31d   : > { %v664_v17 = vmul.f32 1.442695, %v660_v16 }
 0x31e   : > { %v657_v18 = vpop.xlane.xlu1 %656  ;;  %v655_v19 = vpop.xlane.xlu0 %654 }
 0x31f   : > { %1018 = vpow2.f32 %v664_v17  ;;  %v662_v20 = vsub.f32 %v637_v10, %v657_v18  ;;  %v661_v21 = vsub.f32 %v1318_v7, %v655_v19 }
 0x321   : > { %v668_v22 = vmul.f32 1.442695, %v662_v20  ;;  %v666_v23 = vmul.f32 1.442695, %v661_v21 }
 0x322   : > { %v659_v24 = vpop.xlane.xlu1 %658 }
 0x323   : > { %1020 = vpow2.f32 %v668_v22  ;;  %v663_v25 = vsub.f32 %v1322_v11, %v659_v24 }
 0x324   : > { %1022 = vpow2.f32 %v666_v23 }
 0x325   : > { %v670_v26 = vmul.f32 1.442695, %v663_v25 }
 0x327   : > { %1024 = vpow2.f32 %v670_v26 }
 0x32c   : > { %v1019_v27 = vpop.eup %1018 }
 0x32d   : > { %v672_v28 = vsel %vm647_vm1, %v1019_v27, 0.0 }
 0x32e   : > { %676 = vadd.xlane.f32.xlu0 %v672_v28 }
 0x330   : > { %v1021_v29 = vpop.eup %1020 }
 0x331   : > { %v1023_v30 = vpop.eup %1022  ;;  %v674_v31 = vsel %vm647_vm1, %v1021_v29, 0.0 }
 0x332   : > { %680 = vadd.xlane.f32.xlu0 %v674_v31  ;;  %v673_v32 = vsel %vm647_vm1, %v1023_v30, 0.0 }
 0x333   : > { %678 = vadd.xlane.f32.xlu1 %v673_v32 }
 0x334   : > { %v1025_v33 = vpop.eup %1024 }
 0x335   : > { %v675_v34 = vsel %vm647_vm1, %v1025_v33, 0.0 }
 0x337   : > { %682 = vadd.xlane.f32.xlu1 %v675_v34 }
 0x3b7   : > { %v677_v35 = vpop.xlane.xlu0 %676 }
 0x3b8   : > { %1026 = vrcp.f32 %v677_v35 }
 0x3bb   : > { %v681_v36 = vpop.xlane.xlu0 %680 }
 0x3bc   : > { %v679_v37 = vpop.xlane.xlu1 %678  ;;  %1028 = vrcp.f32 %v681_v36 }
 0x3bd   : > { %1030 = vrcp.f32 %v679_v37 }
 0x3c0   : > { %v683_v38 = vpop.xlane.xlu1 %682 }
 0x3c1   : > { %1032 = vrcp.f32 %v683_v38 }
 0x3c5   : > { %v1027_v39 = vpop.eup %1026 }
 0x3c6   : > { %v688_v40 = vmul.f32 %v1027_v39, %v672_v28 }
 0x3c8   : > { %v692_v41 = vsel %vm647_vm1, %v688_v40, %v627_v5 }
 0x3c9   : > { %v1029_v42 = vpop.eup %1028  ;;  %696 = vst [vmem:[%s302_s16] sm:$0xff] %v692_v41 }
 0x3ca   : > { %v1031_v43 = vpop.eup %1030  ;;  %v690_v44 = vmul.f32 %v1029_v42, %v674_v31 }
 0x3cb   : > { %v689_v45 = vmul.f32 %v1031_v43, %v673_v32 }
 0x3cc   : > { %v694_v46 = vsel %vm647_vm1, %v690_v44, %v637_v10 }
 0x3cd   : > { %v693_v47 = vsel %vm647_vm1, %v689_v45, %v1318_v7  ;;  %698 = vst [vmem:[%s302_s16 + $0x10] sm:$0xff] %v694_v46 }
 0x3ce   : > { %v1033_v48 = vpop.eup %1032  ;;  %697 = vst [vmem:[%s302_s16 + $0x8] sm:$0xff] %v693_v47 }
 0x3cf   : > { %v691_v49 = vmul.f32 %v1033_v48, %v675_v34 }
 0x3d1   : > { %v695_v50 = vsel %vm647_vm1, %v691_v49, %v1322_v11 }
 0x3d2   : > { %699 = vst [vmem:[%s302_s16 + $0x18] sm:$0xff] %v695_v50 }
 0x3d3   : > { %1099 = shalt.err (!%p1096_p3)
}
 0x3d4   : > { %s1100_s9 = scalar_lea.hbm %s1354_s21, 512  ;;  %s1104_s13 = scalar_lea.hbm %s1408_s7, 1024 }
 0x3d5   : > { %p1101_p2 = scmp.ne.s32.totalorder %s1354_s21, %s1100_s9  ;;  %p1105_p7 = scmp.lt.s32.totalorder %s1354_s21, %s1408_s7 }
 0x3d6   : > { %p1106_p6 = scmp.lt.s32.totalorder %s1104_s13, %s1100_s9 }
 0x3d7   : > { %p1102_p4 = pnand %p1101_p2, %p1241_p5 }
 0x3d8   : > { %p1107_p9 = por %p1106_p6, %p1105_p7 }
 0x3d9   : > { %p1103_p13 = pneg %p1102_p4 }
 0x3db   : > { %p1108_p10 = pnand %p1107_p9, %p1103_p13 }
 0x3dd   : > { %1111 = shalt.err (!%p1108_p10)
}
 0x3de   : > { %s1161_s19 = smov 128   ;;  %s1162_s20 = smov 8  }
 0x3df   : > { %962 = dma.vmem_to_hbm [thread:$0]  (%p1241_p5), %s1356_s18, 512, %s1354_s21, %s1361_s28, %s1161_s19, %s1161_s19, %s1162_s20  }
 0x3e0 PF: > { %p979_p12 = scmp.ge.s32.totalorder %s1154_s27, 2  ;;  %s729_s22 = sand.u32 1, %s1142_s24  }
 0x3e1   : > { %p1418_p8 = scmp.ne.s32.totalorder %s1411_s12, 0  ;;  %s730_s23 = scalar_lea.sflag [#allocation4], %s729_s22 }
 0x3e3   : > { %p972_p11 = pnand %p979_p12, %p1418_p8 }
 0x3e5   : > { %p973_p0 = pneg %p972_p11 }
 0x3e7   : > { %1137 = dma.done.wait (%p973_p0), %s730_s23, 512  }
 0x3e8   : > { %1139 = vsyncadd (%p973_p0), %s730_s23, 4294966784  ;;  %p19_p1 = scmp.ge.s32.totalorder %s1228_s30, 4   ;;  %s1419_s24 = smov %s1146_s25 }
 0x3e9   : > { %s1420_s25 = smov %s1150_s26  ;;  %s1421_s26 = smov %s1239_s10 }
 0x3ea   : > { %s1422_s27 = smov %s1228_s30  ;;  %21 = sbr.rel (!%p19_p1) target bundleno = 5 (0x5), region = 92 }
 0x3ef   :  { %735 = vsyncpa [#allocation3], 1 }
 0x3f0   :  { %737 = vsyncpa [#allocation3 + $0x1], 1 }
 0x3f1   :  { %738 = vsyncpa [#allocation6], 1 }
 0x3f2   :  { %739 = vsyncpa [#allocation4], 1 }
 0x3f3   :  { %741 = vsyncpa [#allocation4 + $0x1], 1 }

// kernel: tpu_custom_call.1
= control target key start
LH: loop header
LB: loop body
LE: loop exit
PB: predicated region body
PF: predicated region fallthrough
CT: control target
= control target key end

     0   :  { %12 = vsyncpa [#allocation3], 0  ;;  %s1401_s0 = inlined_call_operand.vmem [shape: f32[64,16], index: 0, kind: input, shape index: {}]   ;;  %s1402_s1 = inlined_call_operand.vmem [shape: f32[16,128], index: 1, kind: input, shape index: {}]   ;;  %s1403_s2 = inlined_call_operand.vmem [shape: f32[1,128], index: 2, kind: input, shape index: {}]   ;;  %s1404_s3 = inlined_call_operand.hbm [shape: f32[128,128], index: 3, kind: input, shape index: {}]   ;;  %s1405_s4 = inlined_call_operand.vmem [shape: f32[1,128], index: 4, kind: input, shape index: {}]   ;;  %s1406_s5 = inlined_call_operand.hbm [shape: f32[128,128], index: 5, kind: input, shape index: {}]   ;;  %s1407_s6 = inlined_call_operand.vmem [shape: f32[1,128], index: 6, kind: input, shape index: {}]   ;;  %s1408_s7 = inlined_call_operand.hbm [shape: f32[64,128], index: 7, kind: output, shape index: {}]  }
   0x1   :  { %13 = vsyncpa [#allocation6], 0 }
   0x2   :  { %14 = vsyncpa [#allocation4], 0 }
   0x3   :  { %16 = vsyncpa [#allocation4 + $0x1], 0  ;;  %s1203_s24 = smov 0   ;;  %s1205_s25 = smov 0  }
   0x4   :  { %s1207_s26 = smov 0   ;;  %s1209_s27 = smov 0  }
   0x5 LB: > { %s1224_s28 = sadd.s32 4294967295, %s1154_s27   ;;  %s798_s29 = sadd.s32 4294967294, %s1154_s27   ;;  %s1154_s27 = sphi %s1209_s27, %s1422_s27   ;;  %s1150_s26 = sphi %s1207_s26, %s1421_s26   ;;  %s1146_s25 = sphi %s1205_s25, %s1420_s25   ;;  %s1142_s24 = sphi %s1203_s24, %s1419_s24  }
   0x6   : > { %s1228_s30 = sadd.s32 1, %s1154_s27   ;;  %s181_s8 = sadd.s32 1, %s1150_s26 }
   0x7   : > { %s178_s9 = ssub.s32 %s1154_s27, %s1228_s30  ;;  %p191_p0 = scmp.ne.s32.totalorder %s1150_s26, %s1146_s25 }
   0x8   : > { %p179_p1 = scmp.eq.s32.totalorder %s178_s9, 0  ;;  %p192_p2 = scmp.eq.s32.totalorder %s1224_s28, 1 }
   0x9   : > { %p197_p3 = scmp.ne.s32.totalorder %s1146_s25, %s1142_s24  ;;  %p198_p4 = scmp.eq.s32.totalorder %s798_s29, 1 }
   0xa   : > { %s1239_s10 = scalar_select %p179_p1, %s1150_s26, %s181_s8  }
   0xb   : > { %p1241_p5 = por %p192_p2, %p191_p0  ;;  %p1245_p6 = por %p198_p4, %p197_p3 }
   0xc   : > { %p799_p7 = scmp.ge.s32.totalorder %s1154_s27, 1  ;;  %p205_p8 = scmp.lt.s32.totalorder %s1154_s27, 3 }
   0xd   : > { %s1411_s12 = scalar_select %p1245_p6, 1, 0 }
   0xe   : > { %p1409_p9 = scmp.eq.s32.totalorder %s1224_s28, 0  ;;  %p1252_p10 = pnand %p799_p7, %p205_p8 }
   0xf   : > { %s1156_s14 = smov [#allocation2]   ;;  %s1157_s17 = smov [#allocation5]  }
  0x10   : > { %s223_s15 = sshll.u32 %s1156_s14, 4  ;;  %p964_p11 = pneg %p1252_p10  ;;  %s224_s15 = int_to_ptr.vmem [resolvable:$true] %s223_s15 }
  0x11   : > { %s239_s18 = sshll.u32 %s1157_s17, 4  ;;  %s1045_s19 = scalar_lea.vmem %s224_s15, 2048  ;;  %s240_s18 = int_to_ptr.vmem [resolvable:$true] %s239_s18 }
  0x12   : > { %p1260_p12 = pnand %p1409_p9, %p964_p11  ;;  %p1046_p0 = scmp.ne.s32.totalorder %s224_s15, %s1045_s19 }
  0x13   : > { %p1053_p3 = scmp.lt.s32.totalorder %s224_s15, %s224_s15  ;;  %p1054_p4 = scmp.lt.s32.totalorder %s1045_s19, %s1045_s19 }
  0x14   : > { %p1036_p13 = pneg %p1260_p12 }
  0x15   : > { %p1055_p7 = por %p1054_p4, %p1053_p3 }
  0x16   : > { %p1048_p1 = pnand %p1046_p0, %p1036_p13 }
  0x18   : > { %p1049_p2 = pneg %p1048_p1 }
  0x1a   : > { %p1056_p8 = pnand %p1055_p7, %p1049_p2 }
  0x1c   : > { %1059 = shalt.err (!%p1056_p8)
}
  0x1d   : > { %s1158_s20 = smov 128   ;;  %s1159_s21 = smov 8  }
  0x1e   : > { %967 = dma.hbm_to_vmem [thread:$0]  (!%p1260_p12), %s1404_s3, 2048, %s224_s15, [#allocation3], %s1158_s20, %s1158_s20, %s1159_s21  }
  0x1f   : > { %s1071_s29 = scalar_lea.vmem %s240_s18, 2048  ;;  %p1079_p9 = scmp.lt.s32.totalorder %s240_s18, %s240_s18 }
  0x20   : > { %p1072_p11 = scmp.ne.s32.totalorder %s240_s18, %s1071_s29  ;;  %p1080_p6 = scmp.lt.s32.totalorder %s1071_s29, %s1071_s29 }
  0x22   : > { %p1074_p0 = pnand %p1072_p11, %p1036_p13  ;;  %p1081_p3 = por %p1080_p6, %p1079_p9 }
  0x24   : > { %p1075_p1 = pneg %p1074_p0 }
  0x26   : > { %p1082_p2 = pnand %p1081_p3, %p1075_p1 }
  0x28   : > { %1085 = shalt.err (!%p1082_p2)
}
  0x29   : > { %970 = dma.hbm_to_vmem [thread:$0]  (!%p1260_p12), %s1406_s5, 2048, %s240_s18, [#allocation6], %s1158_s20, %s1158_s20, %s1159_s21  }
  0x2a   : > { %267 = sbr.rel (%p1252_p10) target bundleno = 992 (0x3e0), region = 48  ;;  %p1414_p4 = scmp.eq.s32.totalorder (!%p1252_p10), %s1224_s28, 0 }
  0x2f   : > { %1129 = dma.done.wait (%p1414_p4), [#allocation3], 2048   ;;  %p1415_p13 = pmov %p1414_p4 }
  0x30   : > { %p1416_p7 = pmov %p1414_p4 }
  0x31   : > { %1131 = vsyncadd (%p1415_p13), [#allocation3], 4294965248 }
  0x32   : > { %1133 = dma.done.wait (%p1416_p7), [#allocation6], 2048   ;;  %p1417_p6 = pmov %p1414_p4 }
  0x33   : > { %s807_s14 = sshll.u32 %s1224_s28, 2  ;;  %vm323_vm0 = vcmask 130048   ;;  %v315_v0 = vld [vmem:[%s1402_s1 + $0x8] sm:$0xff]  ;;  %v314_v1 = vld [vmem:[%s1402_s1] sm:$0xff]  ;;  %v440_v4 = vld [vmem:[#allocation2 + $0x78] sm:$0xff]  ;;  %s1160_s23 = smov [#allocation7]  }
  0x34   : > { %1135 = vsyncadd (%p1417_p6), [#allocation6], 4294965248  ;;  %p304_p9 = scmp.lt.s32.totalorder %s807_s14, 7  ;;  %868 = vmatprep.subr.mxu0 %v315_v0  ;;  %v439_v5 = vld [vmem:[#allocation2 + $0x70] sm:$0xff]  ;;  %878 = vmatprep.subr.mxu1 %v440_v4  ;;  %v438_v7 = vld [vmem:[#allocation2 + $0x68] sm:$0xff]  ;;  %s1090_s29 = sshll.u32 %s1160_s23, 4  ;;  %s1091_s29 = int_to_ptr.vmem [resolvable:$false] %s1090_s29 }
  0x35   : > { %869 = vmatpush3.msra.mxu0 %v315_v0  ;;  %879 = vmatpush3.msra.mxu1 %v440_v4  ;;  %v437_v9 = vld [vmem:[#allocation2 + $0x60] sm:$0xff]  ;;  %v436_v10 = vld [vmem:[#allocation2 + $0x58] sm:$0xff]  ;;  %v435_v11 = vld [vmem:[#allocation2 + $0x50] sm:$0xff]  ;;  %v645_v0 = vlaneseq  ;;  %s1092_s8 = scalar_lea.vmem %s1091_s29, 1024 }
  0x36   : > { %s1424_s14 = smov (!%p304_p9, %s807_s14), 7  ;;  %870 = vmatprep.subr.mxu0 %v314_v1  ;;  %880 = vmatprep.subr.mxu1 %v439_v5  ;;  %v434_v12 = vld [vmem:[#allocation2 + $0x48] sm:$0xff]  ;;  %v433_v13 = vld [vmem:[#allocation2 + $0x40] sm:$0xff]  ;;  %v432_v14 = vld [vmem:[#allocation2 + $0x38] sm:$0xff] }
  0x37   : > { %s808_s15 = sshll.u32 %s1424_s14, 3  ;;  %871 = vmatpush3.msra.mxu0 %v314_v1  ;;  %881 = vmatpush3.msra.mxu1 %v439_v5  ;;  %v431_v15 = vld [vmem:[#allocation2 + $0x30] sm:$0xff]  ;;  %v430_v16 = vld [vmem:[#allocation2 + $0x28] sm:$0xff]  ;;  %v429_v17 = vld [vmem:[#allocation2 + $0x20] sm:$0xff] }
  0x38   : > { %s307_s17 = scalar_lea.vmem %s1401_s0, %s808_s15  ;;  %882 = vmatprep.subr.mxu1 %v438_v7  ;;  %v428_v18 = vld [vmem:[#allocation2 + $0x18] sm:$0xff]  ;;  %v427_v19 = vld [vmem:[#allocation2 + $0x10] sm:$0xff]  ;;  %v426_v20 = vld [vmem:[#allocation2 + $0x8] sm:$0xff]  ;;  %s300_s15 = sand.u32 1, %s1146_s25  }
  0x39   : > { %v310_v2 = vld [vmem:[%s307_s17] sm:$0xff]  ;;  %v311_v3 = vld [vmem:[%s307_s17 + $0x8] sm:$0xff]  ;;  %v312_v6 = vld [vmem:[%s307_s17 + $0x10] sm:$0xff]  ;;  %883 = vmatpush3.msra.mxu1 %v438_v7  ;;  %s806_s13 = sshll.u32 %s300_s15, 5 }
  0x3a   : > { %872 = vmatprep.mubr.msk.f32.mxu0 %vm323_vm0, %v310_v2  ;;  %v313_v8 = vld [vmem:[%s307_s17 + $0x18] sm:$0xff]  ;;  %884 = vmatprep.subr.mxu1 %v437_v9  ;;  %v425_v21 = vld [vmem:[#allocation2] sm:$0xff]  ;;  %v551_v23 = vld [vmem:[#allocation5 + $0x70] sm:$0xff]  ;;  %v1312_v2 = vand.u32 127, %v645_v0  ;;  %s302_s16 = scalar_lea.vmem [#allocation7], %s806_s13  ;;  %s821_s17 = sshll.u32 %s1224_s28, 9 }
  0x3b   : > { %873 = vmatmul.mubr.msk.f32.vlgmr.msra.gmra.mxu0 %vm323_vm0, %v311_v3  ;;  %885 = vmatpush3.msra.mxu1 %v437_v9  ;;  %v552_v22 = vld [vmem:[#allocation5 + $0x78] sm:$0xff]  ;;  %v550_v24 = vld [vmem:[#allocation5 + $0x68] sm:$0xff]  ;;  %v549_v25 = vld [vmem:[#allocation5 + $0x60] sm:$0xff]  ;;  %s714_s18 = sshll.u32 %s302_s16, 4  ;;  %s1354_s21 = scalar_lea.hbm %s1408_s7, %s821_s17  ;;  %s1356_s18 = int_to_ptr.vmem [resolvable:$true] %s714_s18 }
  0x3c   : > { %875 = vmatprep.mubr.msk.f32.mxu0 %vm323_vm0, %v312_v6  ;;  %886 = vmatprep.subr.mxu1 %v436_v10  ;;  %v548_v26 = vld [vmem:[#allocation5 + $0x58] sm:$0xff]  ;;  %v547_v27 = vld [vmem:[#allocation5 + $0x50] sm:$0xff]  ;;  %v546_v28 = vld [vmem:[#allocation5 + $0x48] sm:$0xff]  ;;  %vm647_vm1 = vcmp.lt.s32.totalorder %v1312_v2, 4  ;;  %s1361_s28 = scalar_lea.sflag [#allocation4], %s300_s15  ;;  %s1086_s22 = scalar_lea.vmem %s1356_s18, 512 }
  0x3d   : > { %887 = vmatpush3.msra.mxu1 %v436_v10  ;;  %916 = vmatprep.subr.mxu0 %v552_v22  ;;  %v545_v29 = vld [vmem:[#allocation5 + $0x40] sm:$0xff]  ;;  %v544_v30 = vld [vmem:[#allocation5 + $0x38] sm:$0xff]  ;;  %v543_v31 = vld [vmem:[#allocation5 + $0x30] sm:$0xff]  ;;  %p1087_p10 = scmp.ne.s32.totalorder %s1356_s18, %s1086_s22  ;;  %p1093_p11 = scmp.lt.s32.totalorder %s1356_s18, %s1091_s29 }
  0x3e   : > { %888 = vmatprep.subr.mxu1 %v435_v11  ;;  %917 = vmatpush3.msra.mxu0 %v552_v22  ;;  %v542_v32 = vld [vmem:[#allocation5 + $0x28] sm:$0xff]  ;;  %v541_v33 = vld [vmem:[#allocation5 + $0x20] sm:$0xff]  ;;  %v540_v47 = vld [vmem:[#allocation5 + $0x18] sm:$0xff]  ;;  %p1094_p0 = scmp.lt.s32.totalorder %s1092_s8, %s1086_s22 }
  0x3f   : > { %876 = vmatmul.mubr.msk.f32.gmra.mxu0 %vm323_vm0, %v313_v8  ;;  %889 = vmatpush3.msra.mxu1 %v435_v11  ;;  %v809_v34 = vld [vmem:[%s1403_s2] ss:$0 sm:$0xff]  ;;  %v539_v48 = vld [vmem:[#allocation5 + $0x10] sm:$0xff]  ;;  %v538_v49 = vld [vmem:[#allocation5 + $0x8] sm:$0xff]  ;;  %p1088_p12 = pnand %p1087_p10, %p1241_p5 }
  0x40   : > { %890 = vmatprep.subr.mxu1 %v434_v12  ;;  %918 = vmatprep.subr.mxu0 %v551_v23  ;;  %v537_v50 = vld [vmem:[#allocation5] sm:$0xff]  ;;  %p1095_p1 = por %p1094_p0, %p1093_p11 }
  0x41   : > { %891 = vmatpush3.msra.mxu1 %v434_v12  ;;  %919 = vmatpush3.msra.mxu0 %v551_v23  ;;  %v814_v51 = vld [vmem:[%s1405_s4] ss:$0 sm:$0xff]  ;;  %p1089_p8 = pneg %p1088_p12 }
  0x42   : > { %892 = vmatprep.subr.mxu1 %v433_v13  ;;  %920 = vmatprep.subr.mxu0 %v550_v24  ;;  %v815_v3 = vld [vmem:[%s1407_s6] ss:$0 sm:$0xff] }
  0x43   : > { %893 = vmatpush3.msra.mxu1 %v433_v13  ;;  %921 = vmatpush3.msra.mxu0 %v550_v24  ;;  %p1096_p3 = pnand %p1095_p1, %p1089_p8 }
  0x44   : > { %894 = vmatprep.subr.mxu1 %v432_v14  ;;  %922 = vmatprep.subr.mxu0 %v549_v25 }
  0x45   : > { %895 = vmatpush3.msra.mxu1 %v432_v14  ;;  %923 = vmatpush3.msra.mxu0 %v549_v25 }
  0x46   : > { %896 = vmatprep.subr.mxu1 %v431_v15  ;;  %924 = vmatprep.subr.mxu0 %v548_v26 }
  0x47   : > { %897 = vmatpush3.msra.mxu1 %v431_v15  ;;  %925 = vmatpush3.msra.mxu0 %v548_v26 }
  0x48   : > { %898 = vmatprep.subr.mxu1 %v430_v16  ;;  %926 = vmatprep.subr.mxu0 %v547_v27 }
  0x49   : > { %899 = vmatpush3.msra.mxu1 %v430_v16  ;;  %927 = vmatpush3.msra.mxu0 %v547_v27 }
  0x4a   : > { %900 = vmatprep.subr.mxu1 %v429_v17  ;;  %928 = vmatprep.subr.mxu0 %v546_v28 }
  0x4b   : > { %901 = vmatpush3.msra.mxu1 %v429_v17  ;;  %929 = vmatpush3.msra.mxu0 %v546_v28 }
  0x4c   : > { %902 = vmatprep.subr.mxu1 %v428_v18  ;;  %930 = vmatprep.subr.mxu0 %v545_v29 }
  0x4d   : > { %903 = vmatpush3.msra.mxu1 %v428_v18  ;;  %931 = vmatpush3.msra.mxu0 %v545_v29 }
  0x4e   : > { %904 = vmatprep.subr.mxu1 %v427_v19  ;;  %932 = vmatprep.subr.mxu0 %v544_v30 }
  0x4f   : > { %905 = vmatpush3.msra.mxu1 %v427_v19  ;;  %933 = vmatpush3.msra.mxu0 %v544_v30 }
  0x50   : > { %906 = vmatprep.subr.mxu1 %v426_v20  ;;  %934 = vmatprep.subr.mxu0 %v543_v31 }
  0x51   : > { %907 = vmatpush3.msra.mxu1 %v426_v20  ;;  %935 = vmatpush3.msra.mxu0 %v543_v31 }
  0x52   : > { %908 = vmatprep.subr.mxu1 %v425_v21  ;;  %936 = vmatprep.subr.mxu0 %v542_v32 }
  0x53   : > { %909 = vmatpush3.msra.mxu1 %v425_v21  ;;  %937 = vmatpush3.msra.mxu0 %v542_v32 }
  0x54   : > { %938 = vmatprep.subr.mxu0 %v541_v33 }
  0x55   : > { %939 = vmatpush3.msra.mxu0 %v541_v33 }
  0x56   : > { %940 = vmatprep.subr.mxu0 %v540_v47 }
  0x57   : > { %941 = vmatpush3.msra.mxu0 %v540_v47 }
  0x58   : > { %942 = vmatprep.subr.mxu0 %v539_v48 }
  0x59   : > { %943 = vmatpush3.msra.mxu0 %v539_v48 }
  0x5a   : > { %944 = vmatprep.subr.mxu0 %v538_v49 }
  0x5b   : > { %945 = vmatpush3.msra.mxu0 %v538_v49 }
  0x5c   : > { %946 = vmatprep.subr.mxu0 %v537_v50 }
  0x5d   : > { %947 = vmatpush3.msra.mxu0 %v537_v50 }
  0xfb   : > { %v874_v35 = vpop.f32.mrf.mxu0 }
  0xfc   : > { %v408_v36 = vadd.f32 %v874_v35, %v809_v34 }
  0xfd   : > { %v402_v37 = vpop.f32.mrf.mxu0 }
  0xfe   : > { %v403_v38 = vadd.f32 %v809_v34, %v402_v37  ;;  %v422_v41 = vmax.f32 %v408_v36, 0.0 }
  0xff   : > { %v877_v39 = vpop.f32.mrf.mxu0 }
 0x100   : > { %v421_v40 = vmax.f32 %v403_v38, 0.0  ;;  %v418_v42 = vadd.f32 %v877_v39, %v809_v34 }
 0x101   : > { %v412_v43 = vpop.f32.mrf.mxu0 }
 0x102   : > { %v413_v44 = vadd.f32 %v809_v34, %v412_v43  ;;  %910 = vmatprep.mubr.f32.mxu1 %v421_v40  ;;  %v424_v46 = vmax.f32 %v418_v42, 0.0 }
 0x103   : > { %911 = vmatmul.mubr.f32.vlgmr.msra.gmra.mxu1 %v422_v41 }
 0x104   : > { %v423_v45 = vmax.f32 %v413_v44, 0.0 }
 0x106   : > { %913 = vmatprep.mubr.f32.mxu1 %v423_v45 }
 0x107   : > { %914 = vmatmul.mubr.f32.gmra.mxu1 %v424_v46 }
 0x1c3   : > { %v912_v52 = vpop.f32.mrf.mxu1 }
 0x1c4   : > { %v520_v53 = vadd.f32 %v912_v52, %v814_v51 }
 0x1c5   : > { %v514_v54 = vpop.f32.mrf.mxu1 }
 0x1c6   : > { %v515_v55 = vadd.f32 %v814_v51, %v514_v54  ;;  %v534_v58 = vmax.f32 %v520_v53, 0.0 }
 0x1c7   : > { %v915_v56 = vpop.f32.mrf.mxu1 }
 0x1c8   : > { %v533_v57 = vmax.f32 %v515_v55, 0.0  ;;  %v530_v59 = vadd.f32 %v915_v56, %v814_v51 }
 0x1c9   : > { %v524_v60 = vpop.f32.mrf.mxu1 }
 0x1ca   : > { %v525_v61 = vadd.f32 %v814_v51, %v524_v60  ;;  %948 = vmatprep.mubr.f32.mxu0 %v533_v57  ;;  %v536_v63 = vmax.f32 %v530_v59, 0.0 }
 0x1cb   : > { %949 = vmatmul.mubr.f32.vlgmr.msra.gmra.mxu0 %v534_v58 }
 0x1cc   : > { %v535_v62 = vmax.f32 %v525_v61, 0.0 }
 0x1ce   : > { %951 = vmatprep.mubr.f32.mxu0 %v535_v62 }
 0x1cf   : > { %952 = vmatmul.mubr.f32.gmra.mxu0 %v536_v63 }
 0x28b   : > { %v950_v1 = vpop.f32.mrf.mxu0 }
 0x28c   : > { %v1318_v7 = vadd.f32 %v950_v1, %v815_v3 }
 0x28d   : > { %v626_v4 = vpop.f32.mrf.mxu0 }
 0x28e   : > { %v627_v5 = vadd.f32 %v815_v3, %v626_v4  ;;  %v649_v13 = vsel %vm647_vm1, %v1318_v7, -inf }
 0x28f   : > { %v953_v6 = vpop.f32.mrf.mxu0 }
 0x290   : > { %v648_v8 = vsel %vm647_vm1, %v627_v5, -inf  ;;  %v1322_v11 = vadd.f32 %v953_v6, %v815_v3 }
 0x291   : > { %v636_v9 = vpop.f32.mrf.mxu0  ;;  %652 = vmax.xlane.f32.xlu0 %v648_v8 }
 0x292   : > { %v637_v10 = vadd.f32 %v815_v3, %v636_v9  ;;  %v651_v14 = vsel %vm647_vm1, %v1322_v11, -inf }
 0x294   : > { %v650_v12 = vsel %vm647_vm1, %v637_v10, -inf }
 0x295   : > { %656 = vmax.xlane.f32.xlu1 %v650_v12  ;;  %654 = vmax.xlane.f32.xlu0 %v649_v13 }
 0x299   : > { %658 = vmax.xlane.f32.xlu1 %v651_v14 }
 0x31a   : > { %v653_v15 = vpop.xlane.xlu0 %652 }
 0x31b   : > { %v660_v16 = vsub.f32 %v627_v5, %v653_v15 }
 0x31d   : > { %v664_v17 = vmul.f32 1.442695, %v660_v16 }
 0x31e   : > { %v657_v18 = vpop.xlane.xlu1 %656  ;;  %v655_v19 = vpop.xlane.xlu0 %654 }
 0x31f   : > { %1018 = vpow2.f32 %v664_v17  ;;  %v662_v20 = vsub.f32 %v637_v10, %v657_v18  ;;  %v661_v21 = vsub.f32 %v1318_v7, %v655_v19 }
 0x321   : > { %v668_v22 = vmul.f32 1.442695, %v662_v20  ;;  %v666_v23 = vmul.f32 1.442695, %v661_v21 }
 0x322   : > { %v659_v24 = vpop.xlane.xlu1 %658 }
 0x323   : > { %1020 = vpow2.f32 %v668_v22  ;;  %v663_v25 = vsub.f32 %v1322_v11, %v659_v24 }
 0x324   : > { %1022 = vpow2.f32 %v666_v23 }
 0x325   : > { %v670_v26 = vmul.f32 1.442695, %v663_v25 }
 0x327   : > { %1024 = vpow2.f32 %v670_v26 }
 0x32c   : > { %v1019_v27 = vpop.eup %1018 }
 0x32d   : > { %v672_v28 = vsel %vm647_vm1, %v1019_v27, 0.0 }
 0x32e   : > { %676 = vadd.xlane.f32.xlu0 %v672_v28 }
 0x330   : > { %v1021_v29 = vpop.eup %1020 }
 0x331   : > { %v1023_v30 = vpop.eup %1022  ;;  %v674_v31 = vsel %vm647_vm1, %v1021_v29, 0.0 }
 0x332   : > { %680 = vadd.xlane.f32.xlu0 %v674_v31  ;;  %v673_v32 = vsel %vm647_vm1, %v1023_v30, 0.0 }
 0x333   : > { %678 = vadd.xlane.f32.xlu1 %v673_v32 }
 0x334   : > { %v1025_v33 = vpop.eup %1024 }
 0x335   : > { %v675_v34 = vsel %vm647_vm1, %v1025_v33, 0.0 }
 0x337   : > { %682 = vadd.xlane.f32.xlu1 %v675_v34 }
 0x3b7   : > { %v677_v35 = vpop.xlane.xlu0 %676 }
 0x3b8   : > { %1026 = vrcp.f32 %v677_v35 }
 0x3bb   : > { %v681_v36 = vpop.xlane.xlu0 %680 }
 0x3bc   : > { %v679_v37 = vpop.xlane.xlu1 %678  ;;  %1028 = vrcp.f32 %v681_v36 }
 0x3bd   : > { %1030 = vrcp.f32 %v679_v37 }
 0x3c0   : > { %v683_v38 = vpop.xlane.xlu1 %682 }
 0x3c1   : > { %1032 = vrcp.f32 %v683_v38 }
 0x3c5   : > { %v1027_v39 = vpop.eup %1026 }
 0x3c6   : > { %v688_v40 = vmul.f32 %v1027_v39, %v672_v28 }
 0x3c8   : > { %v692_v41 = vsel %vm647_vm1, %v688_v40, %v627_v5 }
 0x3c9   : > { %v1029_v42 = vpop.eup %1028  ;;  %696 = vst [vmem:[%s302_s16] sm:$0xff] %v692_v41 }
 0x3ca   : > { %v1031_v43 = vpop.eup %1030  ;;  %v690_v44 = vmul.f32 %v1029_v42, %v674_v31 }
 0x3cb   : > { %v689_v45 = vmul.f32 %v1031_v43, %v673_v32 }
 0x3cc   : > { %v694_v46 = vsel %vm647_vm1, %v690_v44, %v637_v10 }
 0x3cd   : > { %v693_v47 = vsel %vm647_vm1, %v689_v45, %v1318_v7  ;;  %698 = vst [vmem:[%s302_s16 + $0x10] sm:$0xff] %v694_v46 }
 0x3ce   : > { %v1033_v48 = vpop.eup %1032  ;;  %697 = vst [vmem:[%s302_s16 + $0x8] sm:$0xff] %v693_v47 }
 0x3cf   : > { %v691_v49 = vmul.f32 %v1033_v48, %v675_v34 }
 0x3d1   : > { %v695_v50 = vsel %vm647_vm1, %v691_v49, %v1322_v11 }
 0x3d2   : > { %699 = vst [vmem:[%s302_s16 + $0x18] sm:$0xff] %v695_v50 }
 0x3d3   : > { %1099 = shalt.err (!%p1096_p3)
}
 0x3d4   : > { %s1100_s9 = scalar_lea.hbm %s1354_s21, 512  ;;  %s1104_s13 = scalar_lea.hbm %s1408_s7, 1024 }
 0x3d5   : > { %p1101_p2 = scmp.ne.s32.totalorder %s1354_s21, %s1100_s9  ;;  %p1105_p7 = scmp.lt.s32.totalorder %s1354_s21, %s1408_s7 }
 0x3d6   : > { %p1106_p6 = scmp.lt.s32.totalorder %s1104_s13, %s1100_s9 }
 0x3d7   : > { %p1102_p4 = pnand %p1101_p2, %p1241_p5 }
 0x3d8   : > { %p1107_p9 = por %p1106_p6, %p1105_p7 }
 0x3d9   : > { %p1103_p13 = pneg %p1102_p4 }
 0x3db   : > { %p1108_p10 = pnand %p1107_p9, %p1103_p13 }
 0x3dd   : > { %1111 = shalt.err (!%p1108_p10)
}
 0x3de   : > { %s1161_s19 = smov 128   ;;  %s1162_s20 = smov 8  }
 0x3df   : > { %962 = dma.vmem_to_hbm [thread:$0]  (%p1241_p5), %s1356_s18, 512, %s1354_s21, %s1361_s28, %s1161_s19, %s1161_s19, %s1162_s20  }
 0x3e0 PF: > { %p979_p12 = scmp.ge.s32.totalorder %s1154_s27, 2  ;;  %s729_s22 = sand.u32 1, %s1142_s24  }
 0x3e1   : > { %p1418_p8 = scmp.ne.s32.totalorder %s1411_s12, 0  ;;  %s730_s23 = scalar_lea.sflag [#allocation4], %s729_s22 }
 0x3e3   : > { %p972_p11 = pnand %p979_p12, %p1418_p8 }
 0x3e5   : > { %p973_p0 = pneg %p972_p11 }
 0x3e7   : > { %1137 = dma.done.wait (%p973_p0), %s730_s23, 512  }
 0x3e8   : > { %1139 = vsyncadd (%p973_p0), %s730_s23, 4294966784  ;;  %p19_p1 = scmp.ge.s32.totalorder %s1228_s30, 4   ;;  %s1419_s24 = smov %s1146_s25 }
 0x3e9   : > { %s1420_s25 = smov %s1150_s26  ;;  %s1421_s26 = smov %s1239_s10 }
 0x3ea   : > { %s1422_s27 = smov %s1228_s30  ;;  %21 = sbr.rel (!%p19_p1) target bundleno = 5 (0x5), region = 92 }
 0x3ef   :  { %735 = vsyncpa [#allocation3], 1 }
 0x3f0   :  { %737 = vsyncpa [#allocation3 + $0x1], 1 }
 0x3f1   :  { %738 = vsyncpa [#allocation6], 1 }
 0x3f2   :  { %739 = vsyncpa [#allocation4], 1 }
 0x3f3   :  { %741 = vsyncpa [#allocation4 + $0x1], 1 }

</bundles_post_ra>
